<compile_context>
chip_gen: v7x
topology: tpu7x:2x2x1
jax: 0.10.0
libtpu: 0.0.40
codegen_flags: <defaults>
</compile_context>

<pallas_src>
import math

import jax
import jax.numpy as jnp
import numpy as np
from jax import lax
from jax.experimental import pallas as pl
from jax.experimental.pallas import tpu as pltpu

# ---- hyper-params (embed_dim / ff_dim / num_heads from the PyTorch file) ----
EMBED_DIM = 16
FF_DIM = 64
NUM_HEADS = 4
HEAD_DIM = EMBED_DIM // NUM_HEADS
SEQ_DIM = 8          # vocab size == positional-encoding length == sequence length
BATCH = 2
LN_EPS = 1e-5

# wslab row layout (lane layout documented in init_params)
_ROW_BIAS0 = EMBED_DIM            # row 16: [bqkv | b1 | pad]
_ROW_BIAS1 = EMBED_DIM + 1        # row 17: [bo|g1|beta1|b2|g2|beta2|pad]
_ROW_EMBPOS = EMBED_DIM + 2       # rows 18:34: [emb_table ; pos] in lanes 0:E
WSLAB_ROWS = _ROW_EMBPOS + 2 * SEQ_DIM           # 34
W2POOL_ROWS = FF_DIM + EMBED_DIM + NUM_HEADS     # 84


def positional_encoding(seq_len, embed_dim):
    pos = np.arange(seq_len)[:, np.newaxis]
    i = np.arange(embed_dim)[np.newaxis, :]
    angle_rates = 1 / np.power(10000, 2 * (i // 2) / np.float32(embed_dim))
    angle_rads = pos * angle_rates
    pe = np.zeros(angle_rads.shape)
    pe[:, 0::2] = np.sin(angle_rads[:, 0::2])
    pe[:, 1::2] = np.cos(angle_rads[:, 1::2])
    return pe.astype(np.float32)


# ----------------------------- Pallas kernel ---------------------------------
def transformer_kernel(tok_ref, wslab_ref, w2p_ref, o_ref):
    B, S, E = o_ref.shape
    BS = B * S
    H, FF = NUM_HEADS, FF_DIM

    # ---- unpack the two packed operands (static slices; tiny relayouts, huge slack)
    wqkv = wslab_ref[0:E, 0:3 * E]                              # (E, 3E)
    wo = wslab_ref[0:E, 3 * E:4 * E]                            # (E, E)
    w1 = wslab_ref[0:E, 4 * E:4 * E + FF]                       # (E, FF)
    bqkv = wslab_ref[_ROW_BIAS0:_ROW_BIAS0 + 1, 0:3 * E]        # (1, 3E)
    b1 = wslab_ref[_ROW_BIAS0:_ROW_BIAS0 + 1, 3 * E:3 * E + FF]  # (1, FF)
    bo = wslab_ref[_ROW_BIAS1:_ROW_BIAS1 + 1, 0:E]
    g1 = wslab_ref[_ROW_BIAS1:_ROW_BIAS1 + 1, E:2 * E]
    beta1 = wslab_ref[_ROW_BIAS1:_ROW_BIAS1 + 1, 2 * E:3 * E]
    b2 = wslab_ref[_ROW_BIAS1:_ROW_BIAS1 + 1, 3 * E:4 * E]
    g2 = wslab_ref[_ROW_BIAS1:_ROW_BIAS1 + 1, 4 * E:5 * E]
    beta2 = wslab_ref[_ROW_BIAS1:_ROW_BIAS1 + 1, 5 * E:6 * E]
    embpos = wslab_ref[_ROW_EMBPOS:_ROW_EMBPOS + 2 * S, 0:E]    # (2S, E): [emb ; pos]
    w2 = w2p_ref[0:FF, :]                                       # (FF, E)
    pool_eh = w2p_ref[FF:FF + E, 0:H]                           # (E, H), 1/sqrt(Dh) folded
    pool_he = w2p_ref[FF + E:FF + E + H, :]                     # (H, E)

    # ---- fused embedding gather + positional add (one-hot matmul on the MXU) ----
    # one-hot row r: column tok[r] picks emb_table[tok[r]], column S + (r % S) picks
    # pos[s]; a single (BS, 2S) @ (2S, E) matmul therefore produces emb + pos.
    lane = lax.broadcasted_iota(jnp.int32, (1, 2 * S), 1)
    sel_rows = []
    for r in range(BS):                                   # BS = 16, fully static loop
        t = tok_ref[r]                                    # SMEM scalar read
        sel = jnp.logical_or(lane == t, lane == (S + r % S))
        sel_rows.append(sel.astype(jnp.float32))
    onehot = jnp.concatenate(sel_rows, axis=0)                         # (BS, 2S)
    h2 = jnp.dot(onehot, embpos, preferred_element_type=jnp.float32)   # (BS, E)

    # ---- fused QKV projection: one (BS, E) @ (E, 3E) matmul ----
    qkv = jnp.dot(h2, wqkv, preferred_element_type=jnp.float32) + bqkv
    q = qkv[:, 0:E].reshape(B, S, E)
    k = qkv[:, E:2 * E].reshape(B, S, E)
    v = qkv[:, 2 * E:3 * E].reshape(B, S, E)

    # ---- multi-head attention over axis 0 (batch_first=False semantics) ----
    # scores[i, j, s, h] = (1/sqrt(Dh)) * sum_{e in head h} q[i,s,e] * k[j,s,e]
    prod = q[:, None, :, :] * k[None, :, :, :]                         # (B, B, S, E)
    scores = jnp.dot(prod.reshape(B * B * S, E), pool_eh,
                     preferred_element_type=jnp.float32).reshape(B, B, S, H)

    # softmax over the key axis (axis 1)
    m = jnp.max(scores, axis=1, keepdims=True)
    p = jnp.exp(scores - m)
    denom = jnp.sum(p, axis=1, keepdims=True)
    p = p * pl.reciprocal(denom, approx=True)                          # (B, B, S, H)

    # broadcast per-head probs across that head's Dh lanes, weight V, sum over keys
    p_lanes = jnp.dot(p.reshape(B * B * S, H), pool_he,
                      preferred_element_type=jnp.float32).reshape(B, B, S, E)
    ctx = jnp.sum(p_lanes * v[None, :, :, :], axis=1)                  # (B, S, E)

    # output projection
    attn = jnp.dot(ctx.reshape(BS, E), wo, preferred_element_type=jnp.float32) + bo

    # residual + LayerNorm 1
    y = h2 + attn
    mu = jnp.mean(y, axis=-1, keepdims=True)
    var = jnp.mean((y - mu) ** 2, axis=-1, keepdims=True)
    x1 = (y - mu) * lax.rsqrt(var + LN_EPS) * g1 + beta1

    # FFN: Linear(E, FF) -> ReLU -> Linear(FF, E)
    f = jnp.dot(x1, w1, preferred_element_type=jnp.float32) + b1
    f = jnp.maximum(f, 0.0)
    f = jnp.dot(f, w2, preferred_element_type=jnp.float32) + b2

    # residual + LayerNorm 2
    y2 = x1 + f
    mu2 = jnp.mean(y2, axis=-1, keepdims=True)
    var2 = jnp.mean((y2 - mu2) ** 2, axis=-1, keepdims=True)
    out = (y2 - mu2) * lax.rsqrt(var2 + LN_EPS) * g2 + beta2           # (BS, E)

    o_ref[...] = out.reshape(B, S, E)


# ------------------------------- wrapper --------------------------------------
def transformer_forward(tokens, wslab, w2pool):
    B, S = tokens.shape
    tok_flat = tokens.reshape(B * S).astype(jnp.int32)
    # Single invocation (grid=(1,)); tokens prefetched to SMEM, two VMEM operands.
    # TODO(synk): if many (B, S) batches are processed per call, add a leading
    # "parallel" grid axis so both v7x TensorCores are used and launch cost amortizes.
    return pl.pallas_call(
        transformer_kernel,
        out_shape=jax.ShapeDtypeStruct((B, S, EMBED_DIM), jnp.float32),
        grid_spec=pltpu.PrefetchScalarGridSpec(
            num_scalar_prefetch=1,                       # tokens -> SMEM
            grid=(1,),
            in_specs=[
                pl.BlockSpec((WSLAB_ROWS, 128), lambda i, tok: (0, 0)),
                pl.BlockSpec((W2POOL_ROWS, EMBED_DIM), lambda i, tok: (0, 0)),
            ],
            out_specs=pl.BlockSpec((B, S, EMBED_DIM), lambda i, tok: (0, 0, 0)),
        ),
        compiler_params=pltpu.CompilerParams(dimension_semantics=("arbitrary",)),
    )(tok_flat, wslab, w2pool)


# --------------------- deterministic parameter init ---------------------------
def init_params(key):
    ks = jax.random.split(key, 17)
    n = lambda k, shape, s=0.1: (s * jax.random.normal(k, shape)).astype(jnp.float32)
    E, FF, S, H, Dh = EMBED_DIM, FF_DIM, SEQ_DIM, NUM_HEADS, HEAD_DIM

    emb_table = n(ks[0], (S, E), 1.0)
    wq_t, wk_t, wv_t = n(ks[1], (E, E)), n(ks[2], (E, E)), n(ks[3], (E, E))
    bq, bk, bv = n(ks[4], (1, E)), n(ks[5], (1, E)), n(ks[6], (1, E))
    wo_t, bo = n(ks[7], (E, E)), n(ks[8], (1, E))
    g1, beta1 = 1.0 + n(ks[9], (1, E)), n(ks[10], (1, E))
    w1, b1 = n(ks[11], (E, FF)), n(ks[12], (1, FF))
    w2, b2 = n(ks[13], (FF, E)), n(ks[14], (1, E))
    g2, beta2 = 1.0 + n(ks[15], (1, E)), n(ks[16], (1, E))
    pos = jnp.asarray(positional_encoding(S, E))

    wqkv = jnp.concatenate([wq_t, wk_t, wv_t], axis=1)           # (E, 3E)
    bqkv = jnp.concatenate([bq, bk, bv], axis=1)                 # (1, 3E)

    # (34, 128) weight slab (see row-layout constants at top of file)
    w_rows = jnp.concatenate([wqkv, wo_t, w1], axis=1)           # (16, 128) lane-dense
    bias0 = jnp.concatenate(
        [bqkv, b1, jnp.zeros((1, 128 - 3 * E - FF), jnp.float32)], axis=1)
    bias1 = jnp.concatenate(
        [bo, g1, beta1, b2, g2, beta2, jnp.zeros((1, 128 - 6 * E), jnp.float32)],
        axis=1)
    embpos = jnp.concatenate([emb_table, pos], axis=0)           # (2S, E)
    embpos = jnp.pad(embpos, ((0, 0), (0, 128 - E)))             # (2S, 128)
    wslab = jnp.concatenate([w_rows, bias0, bias1, embpos], axis=0)
    assert wslab.shape == (WSLAB_ROWS, 128)

    # (84, 16) slab: [w2 ; pool_eh (1/sqrt(Dh) folded, lane-padded) ; pool_he]
    head_idx = np.arange(E) // Dh
    pool_eh = np.zeros((E, E), np.float32)
    pool_eh[np.arange(E), head_idx] = 1.0 / math.sqrt(Dh)        # scale folded in
    pool_he = np.zeros((H, E), np.float32)
    pool_he[head_idx, np.arange(E)] = 1.0
    w2pool = jnp.concatenate([w2, jnp.asarray(pool_eh), jnp.asarray(pool_he)], axis=0)
    assert w2pool.shape == (W2POOL_ROWS, E)

    return dict(
        wslab=wslab, w2pool=w2pool,
        # unpacked copies kept only for the numpy reference check
        emb_table=emb_table, pos=pos, wqkv=wqkv, bqkv=bqkv, wo_t=wo_t, bo=bo,
        g1=g1, beta1=beta1, w1=w1, b1=b1, w2=w2, b2=b2, g2=g2, beta2=beta2)


# -------------------------- numpy reference (sanity) ---------------------------
def reference_forward_np(tokens, params):
    E, H = EMBED_DIM, NUM_HEADS
    Dh = E // H
    p = {k: np.asarray(v, dtype=np.float32) for k, v in params.items()}
    emb = p["emb_table"][tokens]                                 # (B, S, E)
    h = emb + p["pos"][None, :, :]
    wq_t, wk_t, wv_t = p["wqkv"][:, :E], p["wqkv"][:, E:2 * E], p["wqkv"][:, 2 * E:]
    bq, bk, bv = p["bqkv"][:, :E], p["bqkv"][:, E:2 * E], p["bqkv"][:, 2 * E:]

    L, N, _ = h.shape                      # MHA view: L=B (attended), N=S (batch)
    q = h @ wq_t + bq
    k = h @ wk_t + bk
    v = h @ wv_t + bv
    qh = q.reshape(L, N, H, Dh)
    kh = k.reshape(L, N, H, Dh)
    vh = v.reshape(L, N, H, Dh)
    s = np.einsum("lnhd,mnhd->nhlm", qh, kh) / np.sqrt(Dh)
    s = s - s.max(-1, keepdims=True)
    e = np.exp(s)
    pr = e / e.sum(-1, keepdims=True)
    ctx = np.einsum("nhlm,mnhd->lnhd", pr, vh).reshape(L, N, E)
    attn = ctx @ p["wo_t"] + p["bo"]

    def ln(x, g, b):
        mu = x.mean(-1, keepdims=True)
        var = ((x - mu) ** 2).mean(-1, keepdims=True)
        return (x - mu) / np.sqrt(var + LN_EPS) * g + b

    x1 = ln(h + attn, p["g1"], p["beta1"])
    f = np.maximum(x1 @ p["w1"] + p["b1"], 0.0) @ p["w2"] + p["b2"]
    return ln(x1 + f, p["g2"], p["beta2"])


if __name__ == "__main__":
    key = jax.random.PRNGKey(0)
    pkey, tkey = jax.random.split(key)
    params = init_params(pkey)
    tokens = jax.random.randint(tkey, (BATCH, SEQ_DIM), 0, SEQ_DIM, dtype=jnp.int32)

    fwd = jax.jit(transformer_forward)
    out = jax.block_until_ready(fwd(tokens, params["wslab"], params["w2pool"]))
    assert out.shape == (BATCH, SEQ_DIM, EMBED_DIM) and out.dtype == jnp.float32

    ref = reference_forward_np(np.asarray(tokens), params)
    # f32 throughout; tolerance covers the approx (EUP) reciprocal in the softmax.
    if not np.allclose(np.asarray(out), ref, atol=1e-2, rtol=1e-2):
        raise AssertionError(
            f"kernel/reference mismatch, max abs diff = {np.abs(np.asarray(out) - ref).max()}")
    print("KERNEL_OK")
</pallas_src>

<mosaic_0001>
module attributes {stable_mosaic.version = 11 : i64} {
  func.func @transformer_kernel(%arg0: i32, %arg1: memref<16xi32, #tpu.memory_space<smem>>, %arg2: memref<34x128xf32, #tpu.memory_space<vmem>>, %arg3: memref<84x16xf32, #tpu.memory_space<vmem>>, %arg4: memref<2x8x16xf32, #tpu.memory_space<vmem>>) attributes {dimension_semantics = [#tpu.dimension_semantics<arbitrary>], iteration_bounds = array<i64: 1>, scalar_prefetch = 1 : i64, scratch_operands = 0 : i64, tpu.core_type = #tpu.core_type<tc>, window_params = [{pipeline_mode = #tpu.pipeline_mode<synchronous>, transform_indices = @transform_0, window_bounds = array<i64: 34, 128>}, {pipeline_mode = #tpu.pipeline_mode<synchronous>, transform_indices = @transform_1, window_bounds = array<i64: 84, 16>}, {pipeline_mode = #tpu.pipeline_mode<synchronous>, transform_indices = @transform_2, window_bounds = array<i64: 2, 8, 16>}]} {
    %c0 = arith.constant 0 : index
    %c0_0 = arith.constant 0 : index
    %0 = vector.load %arg2[%c0, %c0_0] : memref<34x128xf32, #tpu.memory_space<vmem>>, vector<16x48xf32>
    %c0_1 = arith.constant 0 : index
    %c48 = arith.constant 48 : index
    %1 = vector.load %arg2[%c0_1, %c48] : memref<34x128xf32, #tpu.memory_space<vmem>>, vector<16x16xf32>
    %c0_2 = arith.constant 0 : index
    %c64 = arith.constant 64 : index
    %2 = vector.load %arg2[%c0_2, %c64] : memref<34x128xf32, #tpu.memory_space<vmem>>, vector<16x64xf32>
    %c16 = arith.constant 16 : index
    %c0_3 = arith.constant 0 : index
    %3 = vector.load %arg2[%c16, %c0_3] : memref<34x128xf32, #tpu.memory_space<vmem>>, vector<1x48xf32>
    %c16_4 = arith.constant 16 : index
    %c48_5 = arith.constant 48 : index
    %4 = vector.load %arg2[%c16_4, %c48_5] : memref<34x128xf32, #tpu.memory_space<vmem>>, vector<1x64xf32>
    %c17 = arith.constant 17 : index
    %c0_6 = arith.constant 0 : index
    %5 = vector.load %arg2[%c17, %c0_6] : memref<34x128xf32, #tpu.memory_space<vmem>>, vector<1x16xf32>
    %c17_7 = arith.constant 17 : index
    %c16_8 = arith.constant 16 : index
    %6 = vector.load %arg2[%c17_7, %c16_8] : memref<34x128xf32, #tpu.memory_space<vmem>>, vector<1x16xf32>
    %c17_9 = arith.constant 17 : index
    %c32 = arith.constant 32 : index
    %7 = vector.load %arg2[%c17_9, %c32] : memref<34x128xf32, #tpu.memory_space<vmem>>, vector<1x16xf32>
    %c17_10 = arith.constant 17 : index
    %c48_11 = arith.constant 48 : index
    %8 = vector.load %arg2[%c17_10, %c48_11] : memref<34x128xf32, #tpu.memory_space<vmem>>, vector<1x16xf32>
    %c17_12 = arith.constant 17 : index
    %c64_13 = arith.constant 64 : index
    %9 = vector.load %arg2[%c17_12, %c64_13] : memref<34x128xf32, #tpu.memory_space<vmem>>, vector<1x16xf32>
    %c17_14 = arith.constant 17 : index
    %c80 = arith.constant 80 : index
    %10 = vector.load %arg2[%c17_14, %c80] : memref<34x128xf32, #tpu.memory_space<vmem>>, vector<1x16xf32>
    %c18 = arith.constant 18 : index
    %c0_15 = arith.constant 0 : index
    %11 = vector.load %arg2[%c18, %c0_15] : memref<34x128xf32, #tpu.memory_space<vmem>>, vector<16x16xf32>
    %c0_16 = arith.constant 0 : index
    %c0_17 = arith.constant 0 : index
    %12 = vector.load %arg3[%c0_16, %c0_17] : memref<84x16xf32, #tpu.memory_space<vmem>>, vector<64x16xf32>
    %c64_18 = arith.constant 64 : index
    %c0_19 = arith.constant 0 : index
    %13 = vector.load %arg3[%c64_18, %c0_19] : memref<84x16xf32, #tpu.memory_space<vmem>>, vector<16x4xf32>
    %c80_20 = arith.constant 80 : index
    %c0_21 = arith.constant 0 : index
    %14 = vector.load %arg3[%c80_20, %c0_21] : memref<84x16xf32, #tpu.memory_space<vmem>>, vector<4x16xf32>
    %15 = tpu.iota {dimensions = array<i32: 1>} : vector<1x16xi32>
    %c0_22 = arith.constant 0 : index
    %16 = memref.load %arg1[%c0_22] : memref<16xi32, #tpu.memory_space<smem>>
    %17 = vector.broadcast %16 : i32 to vector<1x16xi32>
    %18 = arith.cmpi eq, %15, %17 : vector<1x16xi32>
    %c8_i32 = arith.constant 8 : i32
    %19 = vector.broadcast %c8_i32 : i32 to vector<1x16xi32>
    %20 = arith.cmpi eq, %15, %19 : vector<1x16xi32>
    %21 = arith.ori %18, %20 : vector<1x16xi1>
    %22 = arith.extui %21 : vector<1x16xi1> to vector<1x16xi32>
    %23 = arith.sitofp %22 : vector<1x16xi32> to vector<1x16xf32>
    %c1 = arith.constant 1 : index
    %24 = memref.load %arg1[%c1] : memref<16xi32, #tpu.memory_space<smem>>
    %25 = vector.broadcast %24 : i32 to vector<1x16xi32>
    %26 = arith.cmpi eq, %15, %25 : vector<1x16xi32>
    %c9_i32 = arith.constant 9 : i32
    %27 = vector.broadcast %c9_i32 : i32 to vector<1x16xi32>
    %28 = arith.cmpi eq, %15, %27 : vector<1x16xi32>
    %29 = arith.ori %26, %28 : vector<1x16xi1>
    %30 = arith.extui %29 : vector<1x16xi1> to vector<1x16xi32>
    %31 = arith.sitofp %30 : vector<1x16xi32> to vector<1x16xf32>
    %c2 = arith.constant 2 : index
    %32 = memref.load %arg1[%c2] : memref<16xi32, #tpu.memory_space<smem>>
    %33 = vector.broadcast %32 : i32 to vector<1x16xi32>
    %34 = arith.cmpi eq, %15, %33 : vector<1x16xi32>
    %c10_i32 = arith.constant 10 : i32
    %35 = vector.broadcast %c10_i32 : i32 to vector<1x16xi32>
    %36 = arith.cmpi eq, %15, %35 : vector<1x16xi32>
    %37 = arith.ori %34, %36 : vector<1x16xi1>
    %38 = arith.extui %37 : vector<1x16xi1> to vector<1x16xi32>
    %39 = arith.sitofp %38 : vector<1x16xi32> to vector<1x16xf32>
    %c3 = arith.constant 3 : index
    %40 = memref.load %arg1[%c3] : memref<16xi32, #tpu.memory_space<smem>>
    %41 = vector.broadcast %40 : i32 to vector<1x16xi32>
    %42 = arith.cmpi eq, %15, %41 : vector<1x16xi32>
    %c11_i32 = arith.constant 11 : i32
    %43 = vector.broadcast %c11_i32 : i32 to vector<1x16xi32>
    %44 = arith.cmpi eq, %15, %43 : vector<1x16xi32>
    %45 = arith.ori %42, %44 : vector<1x16xi1>
    %46 = arith.extui %45 : vector<1x16xi1> to vector<1x16xi32>
    %47 = arith.sitofp %46 : vector<1x16xi32> to vector<1x16xf32>
    %c4 = arith.constant 4 : index
    %48 = memref.load %arg1[%c4] : memref<16xi32, #tpu.memory_space<smem>>
    %49 = vector.broadcast %48 : i32 to vector<1x16xi32>
    %50 = arith.cmpi eq, %15, %49 : vector<1x16xi32>
    %c12_i32 = arith.constant 12 : i32
    %51 = vector.broadcast %c12_i32 : i32 to vector<1x16xi32>
    %52 = arith.cmpi eq, %15, %51 : vector<1x16xi32>
    %53 = arith.ori %50, %52 : vector<1x16xi1>
    %54 = arith.extui %53 : vector<1x16xi1> to vector<1x16xi32>
    %55 = arith.sitofp %54 : vector<1x16xi32> to vector<1x16xf32>
    %c5 = arith.constant 5 : index
    %56 = memref.load %arg1[%c5] : memref<16xi32, #tpu.memory_space<smem>>
    %57 = vector.broadcast %56 : i32 to vector<1x16xi32>
    %58 = arith.cmpi eq, %15, %57 : vector<1x16xi32>
    %c13_i32 = arith.constant 13 : i32
    %59 = vector.broadcast %c13_i32 : i32 to vector<1x16xi32>
    %60 = arith.cmpi eq, %15, %59 : vector<1x16xi32>
    %61 = arith.ori %58, %60 : vector<1x16xi1>
    %62 = arith.extui %61 : vector<1x16xi1> to vector<1x16xi32>
    %63 = arith.sitofp %62 : vector<1x16xi32> to vector<1x16xf32>
    %c6 = arith.constant 6 : index
    %64 = memref.load %arg1[%c6] : memref<16xi32, #tpu.memory_space<smem>>
    %65 = vector.broadcast %64 : i32 to vector<1x16xi32>
    %66 = arith.cmpi eq, %15, %65 : vector<1x16xi32>
    %c14_i32 = arith.constant 14 : i32
    %67 = vector.broadcast %c14_i32 : i32 to vector<1x16xi32>
    %68 = arith.cmpi eq, %15, %67 : vector<1x16xi32>
    %69 = arith.ori %66, %68 : vector<1x16xi1>
    %70 = arith.extui %69 : vector<1x16xi1> to vector<1x16xi32>
    %71 = arith.sitofp %70 : vector<1x16xi32> to vector<1x16xf32>
    %c7 = arith.constant 7 : index
    %72 = memref.load %arg1[%c7] : memref<16xi32, #tpu.memory_space<smem>>
    %73 = vector.broadcast %72 : i32 to vector<1x16xi32>
    %74 = arith.cmpi eq, %15, %73 : vector<1x16xi32>
    %c15_i32 = arith.constant 15 : i32
    %75 = vector.broadcast %c15_i32 : i32 to vector<1x16xi32>
    %76 = arith.cmpi eq, %15, %75 : vector<1x16xi32>
    %77 = arith.ori %74, %76 : vector<1x16xi1>
    %78 = arith.extui %77 : vector<1x16xi1> to vector<1x16xi32>
    %79 = arith.sitofp %78 : vector<1x16xi32> to vector<1x16xf32>
    %c8 = arith.constant 8 : index
    %80 = memref.load %arg1[%c8] : memref<16xi32, #tpu.memory_space<smem>>
    %81 = vector.broadcast %80 : i32 to vector<1x16xi32>
    %82 = arith.cmpi eq, %15, %81 : vector<1x16xi32>
    %c8_i32_23 = arith.constant 8 : i32
    %83 = vector.broadcast %c8_i32_23 : i32 to vector<1x16xi32>
    %84 = arith.cmpi eq, %15, %83 : vector<1x16xi32>
    %85 = arith.ori %82, %84 : vector<1x16xi1>
    %86 = arith.extui %85 : vector<1x16xi1> to vector<1x16xi32>
    %87 = arith.sitofp %86 : vector<1x16xi32> to vector<1x16xf32>
    %c9 = arith.constant 9 : index
    %88 = memref.load %arg1[%c9] : memref<16xi32, #tpu.memory_space<smem>>
    %89 = vector.broadcast %88 : i32 to vector<1x16xi32>
    %90 = arith.cmpi eq, %15, %89 : vector<1x16xi32>
    %c9_i32_24 = arith.constant 9 : i32
    %91 = vector.broadcast %c9_i32_24 : i32 to vector<1x16xi32>
    %92 = arith.cmpi eq, %15, %91 : vector<1x16xi32>
    %93 = arith.ori %90, %92 : vector<1x16xi1>
    %94 = arith.extui %93 : vector<1x16xi1> to vector<1x16xi32>
    %95 = arith.sitofp %94 : vector<1x16xi32> to vector<1x16xf32>
    %c10 = arith.constant 10 : index
    %96 = memref.load %arg1[%c10] : memref<16xi32, #tpu.memory_space<smem>>
    %97 = vector.broadcast %96 : i32 to vector<1x16xi32>
    %98 = arith.cmpi eq, %15, %97 : vector<1x16xi32>
    %c10_i32_25 = arith.constant 10 : i32
    %99 = vector.broadcast %c10_i32_25 : i32 to vector<1x16xi32>
    %100 = arith.cmpi eq, %15, %99 : vector<1x16xi32>
    %101 = arith.ori %98, %100 : vector<1x16xi1>
    %102 = arith.extui %101 : vector<1x16xi1> to vector<1x16xi32>
    %103 = arith.sitofp %102 : vector<1x16xi32> to vector<1x16xf32>
    %c11 = arith.constant 11 : index
    %104 = memref.load %arg1[%c11] : memref<16xi32, #tpu.memory_space<smem>>
    %105 = vector.broadcast %104 : i32 to vector<1x16xi32>
    %106 = arith.cmpi eq, %15, %105 : vector<1x16xi32>
    %c11_i32_26 = arith.constant 11 : i32
    %107 = vector.broadcast %c11_i32_26 : i32 to vector<1x16xi32>
    %108 = arith.cmpi eq, %15, %107 : vector<1x16xi32>
    %109 = arith.ori %106, %108 : vector<1x16xi1>
    %110 = arith.extui %109 : vector<1x16xi1> to vector<1x16xi32>
    %111 = arith.sitofp %110 : vector<1x16xi32> to vector<1x16xf32>
    %c12 = arith.constant 12 : index
    %112 = memref.load %arg1[%c12] : memref<16xi32, #tpu.memory_space<smem>>
    %113 = vector.broadcast %112 : i32 to vector<1x16xi32>
    %114 = arith.cmpi eq, %15, %113 : vector<1x16xi32>
    %c12_i32_27 = arith.constant 12 : i32
    %115 = vector.broadcast %c12_i32_27 : i32 to vector<1x16xi32>
    %116 = arith.cmpi eq, %15, %115 : vector<1x16xi32>
    %117 = arith.ori %114, %116 : vector<1x16xi1>
    %118 = arith.extui %117 : vector<1x16xi1> to vector<1x16xi32>
    %119 = arith.sitofp %118 : vector<1x16xi32> to vector<1x16xf32>
    %c13 = arith.constant 13 : index
    %120 = memref.load %arg1[%c13] : memref<16xi32, #tpu.memory_space<smem>>
    %121 = vector.broadcast %120 : i32 to vector<1x16xi32>
    %122 = arith.cmpi eq, %15, %121 : vector<1x16xi32>
    %c13_i32_28 = arith.constant 13 : i32
    %123 = vector.broadcast %c13_i32_28 : i32 to vector<1x16xi32>
    %124 = arith.cmpi eq, %15, %123 : vector<1x16xi32>
    %125 = arith.ori %122, %124 : vector<1x16xi1>
    %126 = arith.extui %125 : vector<1x16xi1> to vector<1x16xi32>
    %127 = arith.sitofp %126 : vector<1x16xi32> to vector<1x16xf32>
    %c14 = arith.constant 14 : index
    %128 = memref.load %arg1[%c14] : memref<16xi32, #tpu.memory_space<smem>>
    %129 = vector.broadcast %128 : i32 to vector<1x16xi32>
    %130 = arith.cmpi eq, %15, %129 : vector<1x16xi32>
    %c14_i32_29 = arith.constant 14 : i32
    %131 = vector.broadcast %c14_i32_29 : i32 to vector<1x16xi32>
    %132 = arith.cmpi eq, %15, %131 : vector<1x16xi32>
    %133 = arith.ori %130, %132 : vector<1x16xi1>
    %134 = arith.extui %133 : vector<1x16xi1> to vector<1x16xi32>
    %135 = arith.sitofp %134 : vector<1x16xi32> to vector<1x16xf32>
    %c15 = arith.constant 15 : index
    %136 = memref.load %arg1[%c15] : memref<16xi32, #tpu.memory_space<smem>>
    %137 = vector.broadcast %136 : i32 to vector<1x16xi32>
    %138 = arith.cmpi eq, %15, %137 : vector<1x16xi32>
    %c15_i32_30 = arith.constant 15 : i32
    %139 = vector.broadcast %c15_i32_30 : i32 to vector<1x16xi32>
    %140 = arith.cmpi eq, %15, %139 : vector<1x16xi32>
    %141 = arith.ori %138, %140 : vector<1x16xi1>
    %142 = arith.extui %141 : vector<1x16xi1> to vector<1x16xi32>
    %143 = arith.sitofp %142 : vector<1x16xi32> to vector<1x16xf32>
    %144 = tpu.concatenate %23, %31, %39, %47, %55, %63, %71, %79, %87, %95, %103, %111, %119, %127, %135, %143 in 0 : vector<1x16xf32>, vector<1x16xf32>, vector<1x16xf32>, vector<1x16xf32>, vector<1x16xf32>, vector<1x16xf32>, vector<1x16xf32>, vector<1x16xf32>, vector<1x16xf32>, vector<1x16xf32>, vector<1x16xf32>, vector<1x16xf32>, vector<1x16xf32>, vector<1x16xf32>, vector<1x16xf32>, vector<1x16xf32> -> vector<16x16xf32>
    %cst = arith.constant dense<0.000000e+00> : vector<16x16xf32>
    %145 = tpu.matmul %144, %11, %cst {dimension_numbers = #tpu.dot_dimension_numbers<[1], [0], [0], [1], [0, 0, 1, 1], [], []>} : vector<16x16xf32>, vector<16x16xf32>, vector<16x16xf32> -> vector<16x16xf32>
    %cst_31 = arith.constant dense<0.000000e+00> : vector<16x48xf32>
    %146 = tpu.matmul %145, %0, %cst_31 {dimension_numbers = #tpu.dot_dimension_numbers<[1], [0], [0], [1], [0, 0, 1, 1], [], []>} : vector<16x16xf32>, vector<16x48xf32>, vector<16x48xf32> -> vector<16x48xf32>
    %147 = vector.broadcast %3 : vector<1x48xf32> to vector<16x48xf32>
    %148 = arith.addf %146, %147 : vector<16x48xf32>
    %149 = vector.extract_strided_slice %148 {offsets = [0, 0], sizes = [16, 16], strides = [1, 1]} : vector<16x48xf32> to vector<16x16xf32>
    %150 = vector.shape_cast %149 : vector<16x16xf32> to vector<2x8x16xf32>
    %151 = vector.extract_strided_slice %148 {offsets = [0, 16], sizes = [16, 16], strides = [1, 1]} : vector<16x48xf32> to vector<16x16xf32>
    %152 = vector.shape_cast %151 : vector<16x16xf32> to vector<2x8x16xf32>
    %153 = vector.extract_strided_slice %148 {offsets = [0, 32], sizes = [16, 16], strides = [1, 1]} : vector<16x48xf32> to vector<16x16xf32>
    %154 = vector.shape_cast %153 : vector<16x16xf32> to vector<2x8x16xf32>
    %155 = vector.shape_cast %150 : vector<2x8x16xf32> to vector<2x1x8x16xf32>
    %156 = vector.shape_cast %152 : vector<2x8x16xf32> to vector<1x2x8x16xf32>
    %157 = vector.broadcast %155 : vector<2x1x8x16xf32> to vector<2x2x8x16xf32>
    %158 = vector.broadcast %156 : vector<1x2x8x16xf32> to vector<2x2x8x16xf32>
    %159 = arith.mulf %157, %158 : vector<2x2x8x16xf32>
    %160 = vector.shape_cast %159 : vector<2x2x8x16xf32> to vector<32x16xf32>
    %cst_32 = arith.constant dense<0.000000e+00> : vector<32x4xf32>
    %161 = tpu.matmul %160, %13, %cst_32 {dimension_numbers = #tpu.dot_dimension_numbers<[1], [0], [0], [1], [0, 0, 1, 1], [], []>} : vector<32x16xf32>, vector<16x4xf32>, vector<32x4xf32> -> vector<32x4xf32>
    %162 = vector.shape_cast %161 : vector<32x4xf32> to vector<2x2x8x4xf32>
    %cst_33 = arith.constant dense<0xFF800000> : vector<2x8x4xf32>
    %163 = vector.multi_reduction <maximumf>, %162, %cst_33 [1] : vector<2x2x8x4xf32> to vector<2x8x4xf32>
    %164 = vector.shape_cast %163 : vector<2x8x4xf32> to vector<2x1x8x4xf32>
    %165 = vector.broadcast %164 : vector<2x1x8x4xf32> to vector<2x2x8x4xf32>
    %166 = arith.subf %162, %165 : vector<2x2x8x4xf32>
    %167 = math.exp %166 : vector<2x2x8x4xf32>
    %cst_34 = arith.constant dense<0.000000e+00> : vector<2x8x4xf32>
    %168 = vector.multi_reduction <add>, %167, %cst_34 [1] : vector<2x2x8x4xf32> to vector<2x8x4xf32>
    %169 = vector.shape_cast %168 : vector<2x8x4xf32> to vector<2x1x8x4xf32>
    %170 = tpu.reciprocal %169 {approx = true} : vector<2x1x8x4xf32> -> vector<2x1x8x4xf32>
    %171 = vector.broadcast %170 : vector<2x1x8x4xf32> to vector<2x2x8x4xf32>
    %172 = arith.mulf %167, %171 : vector<2x2x8x4xf32>
    %173 = vector.shape_cast %172 : vector<2x2x8x4xf32> to vector<32x4xf32>
    %cst_35 = arith.constant dense<0.000000e+00> : vector<32x16xf32>
    %174 = tpu.matmul %173, %14, %cst_35 {dimension_numbers = #tpu.dot_dimension_numbers<[1], [0], [0], [1], [0, 0, 1, 1], [], []>} : vector<32x4xf32>, vector<4x16xf32>, vector<32x16xf32> -> vector<32x16xf32>
    %175 = vector.shape_cast %174 : vector<32x16xf32> to vector<2x2x8x16xf32>
    %176 = vector.shape_cast %154 : vector<2x8x16xf32> to vector<1x2x8x16xf32>
    %177 = vector.broadcast %176 : vector<1x2x8x16xf32> to vector<2x2x8x16xf32>
    %178 = arith.mulf %175, %177 : vector<2x2x8x16xf32>
    %cst_36 = arith.constant dense<0.000000e+00> : vector<2x8x16xf32>
    %179 = vector.multi_reduction <add>, %178, %cst_36 [1] : vector<2x2x8x16xf32> to vector<2x8x16xf32>
    %180 = vector.shape_cast %179 : vector<2x8x16xf32> to vector<16x16xf32>
    %cst_37 = arith.constant dense<0.000000e+00> : vector<16x16xf32>
    %181 = tpu.matmul %180, %1, %cst_37 {dimension_numbers = #tpu.dot_dimension_numbers<[1], [0], [0], [1], [0, 0, 1, 1], [], []>} : vector<16x16xf32>, vector<16x16xf32>, vector<16x16xf32> -> vector<16x16xf32>
    %182 = vector.broadcast %5 : vector<1x16xf32> to vector<16x16xf32>
    %183 = arith.addf %181, %182 : vector<16x16xf32>
    %184 = arith.addf %145, %183 : vector<16x16xf32>
    %cst_38 = arith.constant dense<0.000000e+00> : vector<16xf32>
    %185 = vector.multi_reduction <add>, %184, %cst_38 [1] : vector<16x16xf32> to vector<16xf32>
    %186 = vector.shape_cast %185 : vector<16xf32> to vector<16x1xf32>
    %cst_39 = arith.constant 1.600000e+01 : f32
    %187 = vector.broadcast %cst_39 : f32 to vector<16x1xf32>
    %188 = arith.divf %186, %187 : vector<16x1xf32>
    %189 = vector.broadcast %188 : vector<16x1xf32> to vector<16x16xf32>
    %190 = arith.subf %184, %189 : vector<16x16xf32>
    %191 = arith.mulf %190, %190 : vector<16x16xf32>
    %cst_40 = arith.constant dense<0.000000e+00> : vector<16xf32>
    %192 = vector.multi_reduction <add>, %191, %cst_40 [1] : vector<16x16xf32> to vector<16xf32>
    %193 = vector.shape_cast %192 : vector<16xf32> to vector<16x1xf32>
    %cst_41 = arith.constant 1.600000e+01 : f32
    %194 = vector.broadcast %cst_41 : f32 to vector<16x1xf32>
    %195 = arith.divf %193, %194 : vector<16x1xf32>
    %196 = vector.broadcast %188 : vector<16x1xf32> to vector<16x16xf32>
    %197 = arith.subf %184, %196 : vector<16x16xf32>
    %cst_42 = arith.constant 9.99999974E-6 : f32
    %198 = vector.broadcast %cst_42 : f32 to vector<16x1xf32>
    %199 = arith.addf %195, %198 : vector<16x1xf32>
    %200 = math.rsqrt %199 : vector<16x1xf32>
    %201 = vector.broadcast %200 : vector<16x1xf32> to vector<16x16xf32>
    %202 = arith.mulf %197, %201 : vector<16x16xf32>
    %203 = vector.broadcast %6 : vector<1x16xf32> to vector<16x16xf32>
    %204 = arith.mulf %202, %203 : vector<16x16xf32>
    %205 = vector.broadcast %7 : vector<1x16xf32> to vector<16x16xf32>
    %206 = arith.addf %204, %205 : vector<16x16xf32>
    %cst_43 = arith.constant dense<0.000000e+00> : vector<16x64xf32>
    %207 = tpu.matmul %206, %2, %cst_43 {dimension_numbers = #tpu.dot_dimension_numbers<[1], [0], [0], [1], [0, 0, 1, 1], [], []>} : vector<16x16xf32>, vector<16x64xf32>, vector<16x64xf32> -> vector<16x64xf32>
    %208 = vector.broadcast %4 : vector<1x64xf32> to vector<16x64xf32>
    %209 = arith.addf %207, %208 : vector<16x64xf32>
    %cst_44 = arith.constant 0.000000e+00 : f32
    %210 = vector.broadcast %cst_44 : f32 to vector<16x64xf32>
    %211 = arith.maximumf %209, %210 : vector<16x64xf32>
    %cst_45 = arith.constant dense<0.000000e+00> : vector<16x16xf32>
    %212 = tpu.matmul %211, %12, %cst_45 {dimension_numbers = #tpu.dot_dimension_numbers<[1], [0], [0], [1], [0, 0, 1, 1], [], []>} : vector<16x64xf32>, vector<64x16xf32>, vector<16x16xf32> -> vector<16x16xf32>
    %213 = vector.broadcast %8 : vector<1x16xf32> to vector<16x16xf32>
    %214 = arith.addf %212, %213 : vector<16x16xf32>
    %215 = arith.addf %206, %214 : vector<16x16xf32>
    %cst_46 = arith.constant dense<0.000000e+00> : vector<16xf32>
    %216 = vector.multi_reduction <add>, %215, %cst_46 [1] : vector<16x16xf32> to vector<16xf32>
    %217 = vector.shape_cast %216 : vector<16xf32> to vector<16x1xf32>
    %cst_47 = arith.constant 1.600000e+01 : f32
    %218 = vector.broadcast %cst_47 : f32 to vector<16x1xf32>
    %219 = arith.divf %217, %218 : vector<16x1xf32>
    %220 = vector.broadcast %219 : vector<16x1xf32> to vector<16x16xf32>
    %221 = arith.subf %215, %220 : vector<16x16xf32>
    %222 = arith.mulf %221, %221 : vector<16x16xf32>
    %cst_48 = arith.constant dense<0.000000e+00> : vector<16xf32>
    %223 = vector.multi_reduction <add>, %222, %cst_48 [1] : vector<16x16xf32> to vector<16xf32>
    %224 = vector.shape_cast %223 : vector<16xf32> to vector<16x1xf32>
    %cst_49 = arith.constant 1.600000e+01 : f32
    %225 = vector.broadcast %cst_49 : f32 to vector<16x1xf32>
    %226 = arith.divf %224, %225 : vector<16x1xf32>
    %227 = vector.broadcast %219 : vector<16x1xf32> to vector<16x16xf32>
    %228 = arith.subf %215, %227 : vector<16x16xf32>
    %cst_50 = arith.constant 9.99999974E-6 : f32
    %229 = vector.broadcast %cst_50 : f32 to vector<16x1xf32>
    %230 = arith.addf %226, %229 : vector<16x1xf32>
    %231 = math.rsqrt %230 : vector<16x1xf32>
    %232 = vector.broadcast %231 : vector<16x1xf32> to vector<16x16xf32>
    %233 = arith.mulf %228, %232 : vector<16x16xf32>
    %234 = vector.broadcast %9 : vector<1x16xf32> to vector<16x16xf32>
    %235 = arith.mulf %233, %234 : vector<16x16xf32>
    %236 = vector.broadcast %10 : vector<1x16xf32> to vector<16x16xf32>
    %237 = arith.addf %235, %236 : vector<16x16xf32>
    %238 = vector.shape_cast %237 : vector<16x16xf32> to vector<2x8x16xf32>
    %c0_51 = arith.constant 0 : index
    %c0_52 = arith.constant 0 : index
    %c0_53 = arith.constant 0 : index
    %239 = vector.load %arg4[%c0_51, %c0_52, %c0_53] : memref<2x8x16xf32, #tpu.memory_space<vmem>>, vector<2x8x16xf32>
    tpu.vector_store %arg4[%c0_51, %c0_52, %c0_53], %238 {strides = array<i32>} : memref<2x8x16xf32, #tpu.memory_space<vmem>>, vector<2x8x16xf32>,
    return
  }
  func.func @transform_0(%arg0: i32, %arg1: memref<16xi32, #tpu.memory_space<smem>>) -> (i32, i32) {
    %c0_i32 = arith.constant 0 : i32
    %c0_i32_0 = arith.constant 0 : i32
    %c0_i32_1 = arith.constant 0 : i32
    return %c0_i32, %c0_i32_0 : i32, i32
  }
  func.func @transform_1(%arg0: i32, %arg1: memref<16xi32, #tpu.memory_space<smem>>) -> (i32, i32) {
    %c0_i32 = arith.constant 0 : i32
    %c0_i32_0 = arith.constant 0 : i32
    %c0_i32_1 = arith.constant 0 : i32
    return %c0_i32, %c0_i32_0 : i32, i32
  }
  func.func @transform_2(%arg0: i32, %arg1: memref<16xi32, #tpu.memory_space<smem>>) -> (i32, i32, i32) {
    %c0_i32 = arith.constant 0 : i32
    %c0_i32_0 = arith.constant 0 : i32
    %c0_i32_1 = arith.constant 0 : i32
    %c0_i32_2 = arith.constant 0 : i32
    return %c0_i32, %c0_i32_0, %c0_i32_1 : i32, i32, i32
  }
}

</mosaic_0001>

<bundles_post_ra>
// kernel: transformer_forward.1
= control target key start
LH: loop header
LB: loop body
LE: loop exit
PB: predicated region body
PF: predicated region fallthrough
CT: control target
= control target key end

     0   :  { %s1607_s0 = inlined_call_operand.vmem [shape: s32[16], index: 0, kind: input, shape index: {}]   ;;  %s1608_s1 = inlined_call_operand.vmem [shape: f32[34,128], index: 1, kind: input, shape index: {}]   ;;  %s1609_s2 = inlined_call_operand.vmem [shape: f32[84,16], index: 2, kind: input, shape index: {}]   ;;  %s1610_s3 = inlined_call_operand.hbm [shape: f32[2,8,16], index: 3, kind: output, shape index: {}]  }
   0x1   :  { %s8_s14 = sshll.u32 %s1607_s0, 4  ;;  %s9_s14 = int_to_ptr.vmem [resolvable:$true] %s8_s14 }
   0x2   :  { %s1183_s15 = scalar_lea.vmem %s9_s14, 16  ;;  %p1188_p1 = scmp.lt.s32.totalorder %s9_s14, %s9_s14 }
   0x3   :  { %p1184_p0 = scmp.ne.s32.totalorder %s9_s14, %s1183_s15  ;;  %p1189_p2 = scmp.lt.s32.totalorder %s1183_s15, %s1183_s15 }
   0x5   :  { %p1190_p3 = por %p1189_p2, %p1188_p1 }
   0x7   :  { %p1191_p4 = pnand %p1190_p3, %p1184_p0 }
   0x9   :  { %1194 = shalt.err (!%p1191_p4)  }
   0xa   :  { %s1221_s16 = smov [#allocation3]  }
   0xb   :  { %11 = dma.vmem_to_smem %s9_s14, 16, %s1221_s16, [#allocation2] }
   0xc   :  { %1217 = dma.done.wait [#allocation2], 16 }
   0xd   :  { %1218 = vsyncadd [#allocation2], 4294967280 }
   0xe   :  { %13 = sfence }
   0xf   :  { %v23_v0 = vld [vmem:[%s1608_s1 + $0x12] sm:$0xff]  ;;  %v24_v1 = vld [vmem:[%s1608_s1 + $0x1a] sm:$0xff]  ;;  %v36_v2 = vlaneseq  ;;  %s38_s0 = sld [smem:[#allocation3]]  ;;  %s954_s21 = sld [smem:[#allocation3 + $0x1]]  ;;  %v1222_v21 = vmov 0.0   ;;  %v1393_v34 = vld [vmem:[%s1608_s1 + $0x8] sm:$0xff] }
  0x10   :  { %v1107_v3 = vpack.c.bf16 %v24_v1, %v23_v0  ;;  %s956_s22 = sld [smem:[#allocation3 + $0x2]]  ;;  %s1262_s23 = sld [smem:[#allocation3 + $0x3]]  ;;  %v1388_v33 = vld [vmem:[%s1608_s1] sm:$0xff]  ;;  %vm1639_vm2 = vcmask 1041408  }
  0x11   :  { %v1260_v4 = vand.u32 127, %v36_v2  ;;  %s1264_s24 = sld [smem:[#allocation3 + $0x4]]  ;;  %s1266_s25 = sld [smem:[#allocation3 + $0x5]]  ;;  %v1111_v45 = vpack.c.bf16 %v1393_v34, %v1388_v33 }
  0x12   :  { %1108 = vmatprep.subr.bf16.mxu0 %v1107_v3  ;;  %s1268_s26 = sld [smem:[#allocation3 + $0x6]]  ;;  %s1270_s27 = sld [smem:[#allocation3 + $0x7]] }
  0x13   :  { %1110 = vmatpush3.bf16.msra.mxu0 %v1107_v3  ;;  %vm41_vm0 = vcmp.eq.s32.totalorder %v1260_v4, 8  ;;  %vm1611_vm1 = vcmp.eq.s32.totalorder %v1260_v4, 9  ;;  %s1274_s28 = sld [smem:[#allocation3 + $0x8]]  ;;  %vm1612_vm3 = vcmp.eq.s32.totalorder %v1260_v4, 10  ;;  %vm1613_vm4 = vcmp.eq.s32.totalorder %v1260_v4, 11  ;;  %s1278_s29 = sld [smem:[#allocation3 + $0x9]]  ;;  %1112 = vmatprep.subr.bf16.mxu1 %v1111_v45 }
  0x14   :  { %s1280_s30 = sld [smem:[#allocation3 + $0xa]]  ;;  %vm69_vm7 = vcmp.eq.s32.totalorder %v1260_v4, 12  ;;  %s1284_s4 = sld [smem:[#allocation3 + $0xb]]  ;;  %vm83_vm5 = vcmp.eq.s32.totalorder %v1260_v4, 14  ;;  %1114 = vmatpush3.bf16.msra.mxu1 %v1111_v45 }
  0x15   :  { %v39_v5 = vstv %s38_s0  ;;  %v46_v6 = vstv %s954_s21  ;;  %s1286_s5 = sld [smem:[#allocation3 + $0xc]]  ;;  %s1298_s6 = sld [smem:[#allocation3 + $0xd]] }
  0x16   :  { %vm40_vm6 = vcmp.eq.s32.totalorder %v1260_v4, %v39_v5  ;;  %v53_v7 = vstv %s956_s22  ;;  %vm47_vm10 = vcmp.eq.s32.totalorder %v1260_v4, %v46_v6  ;;  %v60_v9 = vstv %s1262_s23  ;;  %s1300_s7 = sld [smem:[#allocation3 + $0xe]]  ;;  %s1316_s8 = sld [smem:[#allocation3 + $0xf]] }
  0x17   :  { %vm1290_vm9 = vmor %vm40_vm6, %vm41_vm0  ;;  %vm54_vm11 = vcmp.eq.s32.totalorder %v1260_v4, %v53_v7  ;;  %v67_v10 = vstv %s1264_s24  ;;  %vm61_vm14 = vcmp.eq.s32.totalorder %v1260_v4, %v60_v9  ;;  %v74_v13 = vstv %s1266_s25 }
  0x18   :  { %vm1304_vm13 = vmor %vm47_vm10, %vm1611_vm1  ;;  %vm1310_vm15 = vcmp.eq.s32.totalorder %v1260_v4, %v67_v10  ;;  %vm76_vm6 = vcmp.eq.s32.totalorder %v1260_v4, 13  ;;  %vm1325_vm8 = vcmp.eq.s32.totalorder %v1260_v4, %v74_v13  ;;  %v81_v16 = vstv %s1268_s26 }
  0x19   :  { %vm1320_vm10 = vmor %vm54_vm11, %vm1612_vm3  ;;  %v88_v17 = vstv %s1270_s27  ;;  %vm1339_vm11 = vcmp.eq.s32.totalorder %v1260_v4, %v81_v16  ;;  %vm1614_vm3 = vcmp.eq.s32.totalorder %v1260_v4, 15  ;;  %v95_v20 = vstv %s1274_s28 }
  0x1a   :  { %vm1334_vm12 = vmor %vm61_vm14, %vm1613_vm4  ;;  %v953_v22 = vsel %vm1290_vm9, 1.0, %v1222_v21  ;;  %vm1353_vm1 = vcmp.eq.s32.totalorder %v1260_v4, %v88_v17  ;;  %v101_v24 = vstv %s1278_s29  ;;  %v107_v25 = vstv %s1280_s30 }
  0x1b   :  { %vm70_vm14 = vmor %vm1310_vm15, %vm69_vm7  ;;  %v955_v26 = vsel %vm1304_vm13, 1.0, %v1222_v21  ;;  %v957_v27 = vsel %vm1320_vm10, 1.0, %v1222_v21  ;;  %vm1370_vm15 = vcmp.eq.s32.totalorder %v1260_v4, %v95_v20  ;;  %v113_v29 = vstv %s1284_s4 }
  0x1c   :  { %vm77_vm9 = vmor %vm1325_vm8, %vm76_vm6  ;;  %v959_v30 = vsel %vm1334_vm12, 1.0, %v1222_v21  ;;  %v961_v31 = vsel %vm70_vm14, 1.0, %v1222_v21  ;;  %vm102_vm8 = vcmp.eq.s32.totalorder %v1260_v4, %v101_v24  ;;  %v119_v32 = vstv %s1286_s5 }
  0x1d   :  { %vm84_vm13 = vmor %vm1339_vm11, %vm83_vm5  ;;  %v963_v35 = vsel %vm77_vm9, 1.0, %v1222_v21  ;;  %vm108_vm10 = vcmp.eq.s32.totalorder %v1260_v4, %v107_v25  ;;  %vm1402_vm11 = vcmp.eq.s32.totalorder %v1260_v4, %v113_v29  ;;  %v125_v37 = vstv %s1298_s6 }
  0x1e   :  { %vm91_vm12 = vmor %vm1353_vm1, %vm1614_vm3  ;;  %v965_v38 = vsel %vm84_vm13, 1.0, %v1222_v21  ;;  %vm1413_vm9 = vcmp.eq.s32.totalorder %v1260_v4, %v119_v32  ;;  %v131_v40 = vstv %s1300_s7  ;;  %vm1637_vm1 = vcmask 1040384  }
  0x1f   :  { %vm97_vm14 = vmor %vm1370_vm15, %vm41_vm0  ;;  %v143_v41 = vsel %vm1637_vm1, %v953_v22, %v955_v26  ;;  %vm1638_vm4 = vcmp.eq.s32.totalorder %v1260_v4, 9  ;;  %v137_v42 = vstv %s1316_s8  ;;  %v967_v46 = vsel %vm91_vm12, 1.0, %v1222_v21 }
  0x20   :  { %vm103_vm3 = vmor %vm102_vm8, %vm1638_vm4  ;;  %v145_v43 = vsel %vm1639_vm2, %v143_v41, %v957_v27  ;;  %v969_v44 = vsel %vm97_vm14, 1.0, %v1222_v21  ;;  %vm1640_vm0 = vcmp.eq.s32.totalorder %v1260_v4, 10  ;;  %vm1430_vm13 = vcmp.eq.s32.totalorder %v1260_v4, %v125_v37 }
  0x21   :  { %vm109_vm15 = vmor %vm108_vm10, %vm1640_vm0  ;;  %vm1643_vm1 = vcmask 1042432   ;;  %v971_v49 = vsel %vm103_vm3, 1.0, %v1222_v21  ;;  %vm1644_vm2 = vcmp.eq.s32.totalorder %v1260_v4, 11  ;;  %vm1441_vm8 = vcmp.eq.s32.totalorder %v1260_v4, %v131_v40 }
  0x22   :  { %v147_v48 = vsel %vm1643_vm1, %v145_v43, %v959_v30  ;;  %vm115_vm4 = vmor %vm1402_vm11, %vm1644_vm2  ;;  %vm1647_vm12 = vcmask 1043456   ;;  %v973_v52 = vsel %vm109_vm15, 1.0, %v1222_v21  ;;  %vm1648_vm10 = vcmask 1040384  }
  0x23   :  { %v149_v51 = vsel %vm1647_vm12, %v147_v48, %v961_v31  ;;  %v156_v53 = vsel %vm1648_vm10, %v969_v44, %v971_v49  ;;  %vm121_vm3 = vmor %vm1413_vm9, %vm69_vm7  ;;  %vm138_vm14 = vcmp.eq.s32.totalorder %v1260_v4, %v137_v42  ;;  %vm1649_vm11 = vcmask 1044480  }
  0x24   :  { %v151_v54 = vsel %vm1649_vm11, %v149_v51, %v963_v35  ;;  %v975_v55 = vsel %vm115_vm4, 1.0, %v1222_v21  ;;  %vm1650_vm0 = vcmask 1041408   ;;  %vm127_vm15 = vmor %vm1430_vm13, %vm76_vm6  ;;  %vm1651_vm1 = vcmask 1045504  }
  0x25   :  { %v157_v56 = vsel %vm1650_vm0, %v156_v53, %v973_v52  ;;  %v153_v57 = vsel %vm1651_vm1, %v151_v54, %v965_v38  ;;  %v977_v58 = vsel %vm121_vm3, 1.0, %v1222_v21  ;;  %vm1652_vm2 = vcmask 1042432   ;;  %vm133_vm7 = vmor %vm1441_vm8, %vm83_vm5 }
  0x26   :  { %v158_v59 = vsel %vm1652_vm2, %v157_v56, %v975_v55  ;;  %vm1653_vm9 = vcmask 1046528   ;;  %v979_v61 = vsel %vm127_vm15, 1.0, %v1222_v21  ;;  %vm1654_vm4 = vmmov %vm1647_vm12  ;;  %vm1655_vm12 = vcmp.eq.s32.totalorder %v1260_v4, 15 }
  0x27   :  { %v155_v60 = vsel %vm1653_vm9, %v153_v57, %v967_v46  ;;  %v159_v62 = vsel %vm1654_vm4, %v158_v59, %v977_v58  ;;  %vm139_vm6 = vmor %vm138_vm14, %vm1655_vm12  ;;  %vm1656_vm13 = vcmask 130048   ;;  %v981_v63 = vsel %vm133_vm7, 1.0, %v1222_v21 }
  0x28   :  { %1046 = vmatprep.mubr.msk.f32.mxu0 %vm1656_vm13, %v155_v60  ;;  %vm1657_vm10 = vmmov %vm1649_vm11  ;;  %v983_v1 = vsel %vm139_vm6, 1.0, %v1222_v21 }
  0x29   :  { %v160_v0 = vsel %vm1657_vm10, %v159_v62, %v979_v61  ;;  %vm1658_vm3 = vmmov %vm1651_vm1 }
  0x2a   :  { %v161_v2 = vsel %vm1658_vm3, %v160_v0, %v981_v63 }
  0x2b   :  { %14 = vsyncpa [#allocation5], 0  ;;  %v33_v4 = vld [vmem:[%s1609_s2 + $0x40] sm:$0xff]  ;;  %v34_v7 = vld [vmem:[%s1609_s2 + $0x48] sm:$0xff]  ;;  %s1223_s19 = smov 96   ;;  %s1224_s20 = smov 112   ;;  %v1515_v21 = vpack.i.bf16 %v1393_v34, %v1388_v33 }
  0x2c   :  { %vm1659_vm5 = vmmov %vm1653_vm9  ;;  %v1115_v8 = vpack.c.bf16 %v34_v7, %v33_v4  ;;  %v1496_v9 = vld [vmem:[%s1608_s1 + $0x10] ss:$0 sm:$0xff]  ;;  %s1225_s22 = smov 80   ;;  %s1228_s14 = smov [#allocation4]  }
  0x2d   :  { %v162_v3 = vsel %vm1659_vm5, %v161_v2, %v983_v1  ;;  %vm1660_vm8 = vmmov %vm1656_vm13  ;;  %v35_v20 = vld [vmem:[%s1609_s2 + $0x50] sm:$0xf]  ;;  %s942_s15 = sshll.u32 %s1228_s14, 4  ;;  %s943_s15 = int_to_ptr.vmem [resolvable:$true] %s942_s15 }
  0x2e   :  { %1047 = vmatmul.mubr.msk.f32.vlgmr.msra.gmra.mrb[0].mxu0 %vm1660_vm8, %v162_v3  ;;  %vm1661_vm14 = vmmov %vm1660_vm8  ;;  %1116 = vmatprep.subr.bf16.mxu1 %v1115_v8  ;;  %s1195_s16 = scalar_lea.vmem %s943_s15, 256  ;;  %p1200_p6 = scmp.lt.s32.totalorder %s943_s15, %s943_s15 }
  0x2f   :  { %vm1662_vm11 = vmmov %vm1660_vm8  ;;  %p1196_p5 = scmp.ne.s32.totalorder %s943_s15, %s1195_s16  ;;  %p1201_p7 = scmp.lt.s32.totalorder %s1195_s16, %s1195_s16 }
  0x30   :  { %vm1663_vm0 = vmmov %vm1660_vm8 }
  0x31   :  { %vm1664_vm15 = vmmov %vm1663_vm0  ;;  %p1202_p8 = por %p1201_p7, %p1200_p6 }
  0x32   :  { %vm1665_vm1 = vmmov %vm1663_vm0 }
  0x33   :  { %vm1666_vm2 = vmmov %vm1663_vm0  ;;  %p1203_p9 = pnand %p1202_p8, %p1196_p5 }
  0x34   :  { %vm1667_vm7 = vmmov %vm1654_vm4 }
  0x35   :  { %vm1668_vm9 = vmmov %vm1654_vm4  ;;  %vm439_vm4 = vcmask 31744  }
  0x36   :  { %vm1669_vm12 = vmmov %vm1663_vm0 }
  0x37   :  { %vm1670_vm6 = vmmov %vm1663_vm0 }
  0x38   :  { %vm1671_vm13 = vmmov %vm1663_vm0 }
  0x39   :  { %vm1672_vm10 = vmmov %vm1663_vm0 }
  0x3a   :  { %vm1673_vm3 = vmmov %vm1663_vm0 }
  0x3b   :  { %vm1674_vm5 = vmmov %vm1663_vm0 }
  0x3c   :  { %vm1675_vm8 = vmmov %vm1663_vm0 }
 0x101   :  { %v1479_v5 = vpop.f32.mrb[0].mxu0 }
 0x102   :  { %v1481_v6 = vpop.f32.mrb[1].mxu0 }
 0x103   :  { %1053 = vmatprep.mubr.msk.f32.mxu1 %vm1661_vm14, %v1481_v6  ;;  %vm1676_vm14 = vmmov %vm1663_vm0 }
 0x104   :  { %1054 = vmatmul.mubr.msk.f32.vlgmr.msra.gmra.mrb[0].mxu1 %vm1662_vm11, %v1479_v5  ;;  %vm1677_vm11 = vmmov %vm1663_vm0 }
 0x105   :  { %1118 = vmatpush3.bf16.msra.mxu1 %v1115_v8 }
 0x106   :  { %1066 = vmatprep.subr.msk.mxu1 %vm1667_vm7, %v35_v20  ;;  %vm1680_vm7 = vmmov %vm1663_vm0 }
 0x1d7   :  { %v1055_v10 = vpop.f32.mrb[0].mxu1 }
 0x1d8   :  { %v321_v11 = vpop.f32.mrb[1].mxu1  ;;  %v327_v13 = vadd.f32 %v1055_v10, %v1496_v9 }
 0x1d9   :  { %v322_v12 = vadd.f32 %v1496_v9, %v321_v11 }
 0x1db   :  { %570 = vrot.lane.b32.xlu1 %v322_v12, %s1223_s19  ;;  %332 = vrot.lane.b32.xlu0 %v322_v12, %s1224_s20 }
 0x1df   :  { %572 = vrot.lane.b32.xlu1 %v327_v13, %s1223_s19  ;;  %334 = vrot.lane.b32.xlu0 %v327_v13, %s1224_s20 }
 0x1e3   :  { %1154 = vrot.lane.b32.xlu0 %v1515_v21, %s1225_s22 }
 0x24d   :  { %v333_v14 = vpop.permute.xlu0 %332  ;;  %v571_v60 = vpop.permute.xlu1 %570 }
 0x24e   :  { %v338_v15 = vmul.f32 %v333_v14, %v322_v12  ;;  %v340_v18 = vmul.f32 %v333_v14, %v327_v13 }
 0x250   :  { %1060 = vmatprep.mubr.msk.f32.mxu1 %vm1663_vm0, %v338_v15  ;;  %v1540_v15 = vld [vmem:[%s1608_s1 + $0x11] ss:$0 sm:$0xff]  ;;  %s1226_s1 = smov 64  }
 0x251   :  { %v335_v16 = vpop.permute.xlu0 %334  ;;  %v573_v61 = vpop.permute.xlu1 %572 }
 0x252   :  { %v339_v17 = vmul.f32 %v335_v16, %v322_v12  ;;  %v341_v19 = vmul.f32 %v335_v16, %v327_v13 }
 0x254   :  { %1061 = vmatmul.mubr.msk.f32.vlgmr.msra.gmra.mrb[2].mxu1 %vm1664_vm15, %v339_v17  ;;  %vm1678_vm15 = vmmov %vm1663_vm0 }
 0x255   :  { %1063 = vmatprep.mubr.msk.f32.mxu1 %vm1665_vm1, %v340_v18  ;;  %1067 = vmatpush3.msk.msra.mxu1 %vm1668_vm9, %v35_v20  ;;  %v1155_v56 = vpop.permute.xlu0 %1154  ;;  %vm1679_vm1 = vmmov %vm1663_vm0 }
 0x256   :  { %v1157_v57 = vunpack.i.h.bf16 %v1155_v56  ;;  %v1156_v58 = vunpack.i.l.bf16 %v1155_v56  ;;  %vm1681_vm9 = vmmov %vm1663_vm0 }
 0x258   :  { %1064 = vmatmul.mubr.msk.f32.gmra.mrb[4].mxu1 %vm1666_vm2, %v341_v19  ;;  %v1119_v59 = vpack.c.bf16 %v1157_v57, %v1156_v58  ;;  %vm815_vm2 = vcmask 523264  }
 0x25a   :  { %1120 = vmatprep.subr.bf16.mxu0 %v1119_v59 }
 0x25b   :  { %1122 = vmatpush3.bf16.msra.mxu0 %v1119_v59 }
 0x327   :  { %v1062_v22 = vpop.f32.mrb[2].mxu1 }
 0x328   :  { %v441_v23 = vsel %vm439_vm4, %v1062_v22, -inf  ;;  %v420_v24 = vpop.f32.mrb[3].mxu1 }
 0x329   :  { %v440_v25 = vsel %vm439_vm4, %v420_v24, -inf }
 0x32a   :  { %v442_v26 = vmax.f32 %v440_v25, %v441_v23 }
 0x32b   :  { %v1065_v27 = vpop.f32.mrb[4].mxu1 }
 0x32c   :  { %v446_v28 = vsub.f32 %v420_v24, %v442_v26  ;;  %v447_v29 = vsub.f32 %v1062_v22, %v442_v26  ;;  %v444_v30 = vsel %vm439_vm4, %v1065_v27, -inf  ;;  %v430_v31 = vpop.f32.mrb[5].mxu1 }
 0x32d   :  { %v443_v32 = vsel %vm439_vm4, %v430_v31, -inf }
 0x32e   :  { %v450_v33 = vmul.f32 1.442695, %v446_v28  ;;  %v452_v34 = vmul.f32 1.442695, %v447_v29  ;;  %v445_v35 = vmax.f32 %v443_v32, %v444_v30 }
 0x330   :  { %1163 = vpow2.f32 %v450_v33  ;;  %v448_v36 = vsub.f32 %v430_v31, %v445_v35  ;;  %v449_v37 = vsub.f32 %v1065_v27, %v445_v35  ;;  %v27_v35 = vld [vmem:[%s1609_s2 + $0x10] sm:$0xff] }
 0x331   :  { %1165 = vpow2.f32 %v452_v34  ;;  %v26_v34 = vld [vmem:[%s1609_s2 + $0x8] sm:$0xff] }
 0x332   :  { %v454_v38 = vmul.f32 1.442695, %v448_v36  ;;  %v456_v39 = vmul.f32 1.442695, %v449_v37 }
 0x334   :  { %1167 = vpow2.f32 %v454_v38  ;;  %v30_v38 = vld [vmem:[%s1609_s2 + $0x28] sm:$0xff] }
 0x335   :  { %1169 = vpow2.f32 %v456_v39 }
 0x33a   :  { %v1164_v40 = vpop.eup %1163 }
 0x33b   :  { %v1166_v41 = vpop.eup %1165  ;;  %v458_v42 = vsel %vm439_vm4, %v1164_v40, 0.0 }
 0x33c   :  { %v459_v43 = vsel %vm439_vm4, %v1166_v41, 0.0 }
 0x33d   :  { %v460_v44 = vadd.f32 %v459_v43, %v458_v42 }
 0x33e   :  { %v1168_v45 = vpop.eup %1167 }
 0x33f   :  { %v1170_v46 = vpop.eup %1169  ;;  %1171 = vrcp.f32 %v460_v44  ;;  %v461_v47 = vsel %vm439_vm4, %v1168_v45, 0.0 }
 0x340   :  { %v462_v48 = vsel %vm439_vm4, %v1170_v46, 0.0 }
 0x341   :  { %v463_v49 = vadd.f32 %v462_v48, %v461_v47 }
 0x343   :  { %1173 = vrcp.f32 %v463_v49 }
 0x349   :  { %v1172_v50 = vpop.eup %1171 }
 0x34a   :  { %v467_v51 = vmul.f32 %v1172_v50, %v1166_v41  ;;  %v466_v52 = vmul.f32 %v1172_v50, %v1164_v40 }
 0x34c   :  { %1068 = vmatprep.mubr.msk.f32.mxu1 %vm439_vm4, %v466_v52 }
 0x34d   :  { %v1174_v53 = vpop.eup %1173  ;;  %1069 = vmatmul.mubr.msk.f32.vlgmr.msra.gmra.mrb[6].mxu1 %vm439_vm4, %v467_v51 }
 0x34e   :  { %v468_v54 = vmul.f32 %v1174_v53, %v1168_v45  ;;  %v469_v55 = vmul.f32 %v1174_v53, %v1170_v46 }
 0x350   :  { %1071 = vmatprep.mubr.msk.f32.mxu1 %vm439_vm4, %v468_v54 }
 0x351   :  { %1072 = vmatmul.mubr.msk.f32.gmra.mrb[8].mxu1 %vm439_vm4, %v469_v55  ;;  %vm1682_vm4 = vmmov %vm1663_vm0 }
 0x420   :  { %v1070_v62 = vpop.f32.mrb[6].mxu1 }
 0x421   :  { %v577_v63 = vmul.f32 %v1070_v62, %v573_v61  ;;  %v551_v0 = vpop.f32.mrb[7].mxu1 }
 0x422   :  { %v576_v1 = vmul.f32 %v571_v60, %v551_v0 }
 0x423   :  { %v581_v2 = vsel %vm1669_vm12, %v577_v63, 0.0  ;;  %vm1683_vm12 = vmmov %vm1663_vm0 }
 0x424   :  { %v580_v3 = vsel %vm1670_vm6, %v576_v1, 0.0  ;;  %v1073_v4 = vpop.f32.mrb[8].mxu1  ;;  %vm1684_vm6 = vmmov %vm1663_vm0 }
 0x425   :  { %v582_v7 = vadd.f32 %v581_v2, %v580_v3  ;;  %v579_v8 = vmul.f32 %v1073_v4, %v573_v61  ;;  %v561_v10 = vpop.f32.mrb[9].mxu1  ;;  %v32_v61 = vld [vmem:[%s1609_s2 + $0x38] sm:$0xff] }
 0x426   :  { %v578_v11 = vmul.f32 %v571_v60, %v561_v10  ;;  %v31_v60 = vld [vmem:[%s1609_s2 + $0x30] sm:$0xff] }
 0x427   :  { %v584_v12 = vsel %vm1671_vm13, %v579_v8, 0.0  ;;  %1078 = vmatprep.mubr.msk.f32.mxu0 %vm1672_vm10, %v582_v7  ;;  %v1139_v62 = vpack.c.bf16 %v32_v61, %v31_v60  ;;  %vm1685_vm13 = vmmov %vm1663_vm0 }
 0x428   :  { %v583_v13 = vsel %vm1673_vm3, %v578_v11, 0.0 }
 0x429   :  { %v585_v14 = vadd.f32 %v584_v12, %v583_v13 }
 0x42b   :  { %1079 = vmatmul.mubr.msk.f32.vlgmr.msra.gmra.mrb[2].mxu0 %vm1674_vm5, %v585_v14 }
 0x4fe   :  { %v1080_v16 = vpop.f32.mrb[2].mxu0 }
 0x4ff   :  { %v676_v17 = vadd.f32 %v1080_v16, %v1540_v15  ;;  %v670_v18 = vpop.f32.mrb[3].mxu0 }
 0x500   :  { %v671_v19 = vadd.f32 %v1540_v15, %v670_v18 }
 0x501   :  { %v680_v20 = vadd.f32 %v1479_v5, %v676_v17 }
 0x502   :  { %v679_v22 = vadd.f32 %v671_v19, %v1481_v6  ;;  %v25_v6 = vld [vmem:[%s1609_s2] sm:$0xff] }
 0x503   :  { %v684_v23 = vsel %vm1675_vm8, %v680_v20, 0.0  ;;  %v1127_v36 = vpack.c.bf16 %v26_v34, %v25_v6 }
 0x504   :  { %685 = vadd.xlane.f32.xlu0 %v684_v23  ;;  %v681_v24 = vsel %vm1676_vm14, %v679_v22, 0.0 }
 0x505   :  { %682 = vadd.xlane.f32.xlu1 %v681_v24  ;;  %1128 = vmatprep.subr.bf16.mxu0 %v1127_v36 }
 0x506   :  { %1130 = vmatpush3.bf16.msra.mxu0 %v1127_v36 }
 0x591   :  { %v686_v25 = vpop.xlane.xlu0 %685 }
 0x592   :  { %v689_v26 = vmul.f32 0.0625, %v686_v25  ;;  %v683_v27 = vpop.xlane.xlu1 %682 }
 0x593   :  { %v688_v28 = vmul.f32 0.0625, %v683_v27 }
 0x594   :  { %v691_v29 = vsub.f32 %v680_v20, %v689_v26 }
 0x595   :  { %v690_v30 = vsub.f32 %v679_v22, %v688_v28 }
 0x596   :  { %v693_v31 = vmul.f32 %v691_v29, %v691_v29 }
 0x597   :  { %v692_v32 = vmul.f32 %v690_v30, %v690_v30 }
 0x598   :  { %v697_v33 = vsel %vm1677_vm11, %v693_v31, 0.0 }
 0x599   :  { %698 = vadd.xlane.f32.xlu1 %v697_v33  ;;  %v694_v5 = vsel %vm1663_vm0, %v692_v32, 0.0 }
 0x59a   :  { %695 = vadd.xlane.f32.xlu0 %v694_v5 }
 0x5aa   :  { %709 = vrot.lane.b32.xlu1 %v1540_v15, %s1224_s20 }
 0x5ae   :  { %714 = vrot.lane.b32.xlu1 %v1540_v15, %s1223_s19 }
 0x5b0   :  { %1159 = vrot.lane.b32.xlu0 %v1515_v21, %s1226_s1  ;;  %v28_v21 = vld [vmem:[%s1609_s2 + $0x18] sm:$0xff] }
 0x5b1   :  { %v1131_v37 = vpack.c.bf16 %v28_v21, %v27_v35 }
 0x5b2   :  { %812 = vrot.lane.b32.xlu1 %v1540_v15, %s1225_s22 }
 0x5b3   :  { %1132 = vmatprep.subr.bf16.mxu0 %v1131_v37 }
 0x5b4   :  { %726 = vrot.lane.b32.xlu0 %v1496_v9, %s1225_s22  ;;  %v29_v9 = vld [vmem:[%s1609_s2 + $0x20] sm:$0xff]  ;;  %1134 = vmatpush3.bf16.msra.mxu0 %v1131_v37  ;;  %s1227_s2 = smov 48  }
 0x5b5   :  { %v1135_v39 = vpack.c.bf16 %v30_v38, %v29_v9 }
 0x5b7   :  { %1136 = vmatprep.subr.bf16.mxu0 %v1135_v39 }
 0x5b8   :  { %1138 = vmatpush3.bf16.msra.mxu0 %v1135_v39 }
 0x5b9   :  { %1140 = vmatprep.subr.bf16.mxu0 %v1139_v62 }
 0x5bc   :  { %1142 = vmatpush3.bf16.msra.mxu0 %v1139_v62 }
 0x626   :  { %v699_v40 = vpop.xlane.xlu1 %698 }
 0x627   :  { %v701_v41 = vmul.f32 0.0625, %v699_v40  ;;  %v696_v42 = vpop.xlane.xlu0 %695 }
 0x628   :  { %v700_v43 = vmul.f32 0.0625, %v696_v42 }
 0x629   :  { %v703_v44 = vadd.f32 1e-05, %v701_v41 }
 0x62a   :  { %v702_v45 = vadd.f32 1e-05, %v700_v43  ;;  %v710_v50 = vpop.permute.xlu1 %709 }
 0x62b   :  { %1175 = vrsqrt.f32 %v703_v44  ;;  %v1160_v46 = vpop.permute.xlu0 %1159 }
 0x62c   :  { %1177 = vrsqrt.f32 %v702_v45  ;;  %v1162_v47 = vunpack.i.h.bf16 %v1160_v46  ;;  %v1161_v48 = vunpack.i.l.bf16 %v1160_v46 }
 0x62e   :  { %v1123_v49 = vpack.c.bf16 %v1162_v47, %v1161_v48  ;;  %v715_v56 = vpop.permute.xlu1 %714 }
 0x62f   :  { %v727_v63 = vpop.permute.xlu0 %726 }
 0x630   :  { %1124 = vmatprep.subr.bf16.mxu1 %v1123_v49 }
 0x631   :  { %1126 = vmatpush3.bf16.msra.mxu1 %v1123_v49 }
 0x632   :  { %v813_v8 = vpop.permute.xlu1 %812 }
 0x635   :  { %v1176_v51 = vpop.eup %1175 }
 0x636   :  { %v1178_v52 = vpop.eup %1177  ;;  %v707_v53 = vmul.f32 %v1176_v51, %v691_v29 }
 0x637   :  { %v706_v54 = vmul.f32 %v1178_v52, %v690_v30 }
 0x638   :  { %v713_v55 = vmul.f32 %v710_v50, %v707_v53 }
 0x639   :  { %v712_v57 = vmul.f32 %v710_v50, %v706_v54 }
 0x63a   :  { %v718_v59 = vadd.f32 %v715_v56, %v713_v55 }
 0x63b   :  { %v717_v58 = vadd.f32 %v715_v56, %v712_v57 }
 0x63d   :  { %1085 = vmatprep.mubr.msk.f32.mxu1 %vm1678_vm15, %v717_v58 }
 0x63e   :  { %1086 = vmatmul.mubr.msk.f32.vlgmr.msra.gmra.mrb[10].mxu1 %vm1679_vm1, %v718_v59 }
 0x711   :  { %v1087_v0 = vpop.f32.mrb[10].mxu1 }
 0x712   :  { %v807_v1 = vadd.f32 %v1087_v0, %v727_v63  ;;  %v801_v2 = vpop.f32.mrb[11].mxu1 }
 0x713   :  { %v802_v3 = vadd.f32 %v801_v2, %v727_v63 }
 0x714   :  { %v811_v7 = vmax.f32 %v807_v1, 0.0 }
 0x715   :  { %v810_v4 = vmax.f32 %v802_v3, 0.0 }
 0x717   :  { %1104 = vmatprep.mubr.msk.f32.mxu0 %vm815_vm2, %v810_v4 }
 0x718   :  { %1105 = vmatmul.mubr.msk.f32.vlgmr.msra.gmra.mrb[4].mxu0 %vm815_vm2, %v811_v7 }
 0x7eb   :  { %v1106_v10 = vpop.f32.mrb[4].mxu0 }
 0x7ec   :  { %v894_v11 = vadd.f32 %v1106_v10, %v813_v8  ;;  %v888_v12 = vpop.f32.mrb[5].mxu0 }
 0x7ed   :  { %v889_v13 = vadd.f32 %v888_v12, %v813_v8 }
 0x7ee   :  { %v898_v14 = vadd.f32 %v894_v11, %v718_v59 }
 0x7ef   :  { %v897_v16 = vadd.f32 %v889_v13, %v717_v58 }
 0x7f0   :  { %v902_v17 = vsel %vm1680_vm7, %v898_v14, 0.0 }
 0x7f1   :  { %903 = vadd.xlane.f32.xlu1 %v902_v17  ;;  %v899_v18 = vsel %vm1681_vm9, %v897_v16, 0.0 }
 0x7f2   :  { %900 = vadd.xlane.f32.xlu0 %v899_v18 }
 0x802   :  { %925 = vrot.lane.b32.xlu1 %v1540_v15, %s1226_s1 }
 0x87e   :  { %v904_v19 = vpop.xlane.xlu1 %903 }
 0x87f   :  { %v906_v20 = vmul.f32 0.0625, %v904_v19  ;;  %v901_v22 = vpop.xlane.xlu0 %900 }
 0x880   :  { %v905_v23 = vmul.f32 0.0625, %v901_v22 }
 0x881   :  { %v908_v24 = vsub.f32 %v898_v14, %v906_v20 }
 0x882   :  { %v907_v25 = vsub.f32 %v897_v16, %v905_v23  ;;  %v926_v35 = vpop.permute.xlu1 %925 }
 0x883   :  { %v910_v28 = vmul.f32 %v908_v24, %v908_v24 }
 0x884   :  { %v909_v26 = vmul.f32 %v907_v25, %v907_v25 }
 0x885   :  { %v914_v29 = vsel %vm1683_vm12, %v910_v28, 0.0 }
 0x886   :  { %v911_v27 = vsel %vm1682_vm4, %v909_v26, 0.0 }
 0x887   :  { %912 = vadd.xlane.f32.xlu0 %v911_v27 }
 0x88b   :  { %915 = vadd.xlane.f32.xlu0 %v914_v29 }
 0x8a1   :  { %930 = vrot.lane.b32.xlu0 %v1540_v15, %s1227_s2 }
 0x914   :  { %v913_v30 = vpop.xlane.xlu0 %912 }
 0x915   :  { %v917_v31 = vmul.f32 0.0625, %v913_v30 }
 0x917   :  { %v919_v32 = vadd.f32 1e-05, %v917_v31 }
 0x918   :  { %v916_v33 = vpop.xlane.xlu0 %915 }
 0x919   :  { %1179 = vrsqrt.f32 %v919_v32  ;;  %v918_v5 = vmul.f32 0.0625, %v916_v33 }
 0x91b   :  { %v920_v6 = vadd.f32 1e-05, %v918_v5 }
 0x91c   :  { %v931_v21 = vpop.permute.xlu0 %930 }
 0x91d   :  { %1181 = vrsqrt.f32 %v920_v6 }
 0x923   :  { %v1180_v34 = vpop.eup %1179 }
 0x924   :  { %v923_v36 = vmul.f32 %v1180_v34, %v907_v25 }
 0x926   :  { %v928_v37 = vmul.f32 %v926_v35, %v923_v36 }
 0x927   :  { %v1182_v9 = vpop.eup %1181 }
 0x928   :  { %v924_v38 = vmul.f32 %v1182_v9, %v908_v24  ;;  %v933_v39 = vadd.f32 %v931_v21, %v928_v37 }
 0x92a   :  { %v929_v40 = vmul.f32 %v926_v35, %v924_v38  ;;  %935 = vst.msk [vmem:[#allocation4] sm:$0xff] %vm1684_vm6, %v933_v39 }
 0x92c   :  { %v934_v15 = vadd.f32 %v931_v21, %v929_v40 }
 0x92e   :  { %936 = vst.msk [vmem:[#allocation4 + $0x8] sm:$0xff] %vm1685_vm13, %v934_v15 }
 0x92f   :  { %1206 = shalt.err (!%p1203_p9)
}
 0x930   :  { %s1207_s19 = scalar_lea.hbm %s1610_s3, 256 }
 0x931   :  { %p1208_p10 = scmp.ne.s32.totalorder %s1610_s3, %s1207_s19  ;;  %p1211_p11 = scmp.lt.u32.totalorder %s1207_s19, %s1610_s3 }
 0x933   :  { %p1213_p12 = pnand %p1211_p11, %p1208_p10 }
 0x935   :  { %1216 = shalt.err (!%p1213_p12)
}
 0x936   :  { %s1229_s23 = smov 128   ;;  %s1230_s24 = smov 8  }
 0x937   :  { %948 = dma.vmem_to_hbm [thread:$0]  %s943_s15, 256, %s1610_s3, [#allocation5], %s1229_s23, %s1229_s23, %s1230_s24  }
 0x938   :  { %1219 = dma.done.wait [#allocation5], 256  }
 0x939   :  { %1220 = vsyncadd [#allocation5], 4294967040 }
 0x93a   :  { %952 = vsyncpa [#allocation5], 1 }

</bundles_post_ra>
